<compile_context>
chip_gen: v5e
topology: v5e:2x2
jax: 0.10.0
libtpu: 0.0.40
codegen_flags: <defaults>
</compile_context>

<pallas_src>
import jax
import jax.numpy as jnp
from jax import lax
from jax.experimental import pallas as pl
from jax.experimental.pallas import tpu as pltpu


# --------------------------------------------------------------------------
# Kernels
# --------------------------------------------------------------------------
def _scores_mxu(hidden_ref, enc_ref):
    """Batched H-contraction on the MXU: (TB,1,H) x (TB,T,H) -> (TB,1,T) f32."""
    return lax.dot_general(
        hidden_ref[...], enc_ref[...],
        dimension_numbers=(((2,), (2,)), ((0,), (0,))),
        preferred_element_type=jnp.float32,
        precision=lax.Precision.HIGHEST,
    )


def _softmax_store(scores, out_ref):
    """Exact softmax over the last (time) axis; store in out_ref's dtype."""
    m = jnp.max(scores, axis=-1, keepdims=True)
    e = jnp.exp(scores - m)
    denom = jnp.sum(e, axis=-1, keepdims=True)
    out_ref[...] = (e / denom).astype(out_ref.dtype)   # exact divide: rows sum to 1


def _attn_dot_masked_kernel(maxlen_ref, seq_ref, hidden_ref, enc_ref, out_ref):
    """One batch tile: MXU scores -> mask_3d(-inf) -> softmax over time."""
    scores = _scores_mxu(hidden_ref, enc_ref)               # (TB, 1, T) f32
    seq = seq_ref[...]                                       # (TB, 1, 1) int32
    max_len = maxlen_ref[0]                                  # global max (SMEM scalar)
    t_idx = lax.broadcasted_iota(jnp.int32, scores.shape, 2)
    # mask_3d semantics: only rows with seq_len < max(seq_len) are masked,
    # and within those rows positions t >= seq_len[b] get -inf.
    mask = (t_idx >= seq) & (seq < max_len)
    scores = jnp.where(mask, -jnp.inf, scores)
    # NOTE: a row with seq_len == 0 (while max_len > 0) yields all -inf and
    # NaNs, exactly like torch.softmax on an all -inf row (bug-compatible).
    _softmax_store(scores, out_ref)


def _attn_dot_kernel(hidden_ref, enc_ref, out_ref):
    """One batch tile: MXU scores -> softmax over time (no masking)."""
    scores = _scores_mxu(hidden_ref, enc_ref)                # (TB, 1, T) f32
    _softmax_store(scores, out_ref)


# --------------------------------------------------------------------------
# Wrapper
# --------------------------------------------------------------------------
def _round_up(x, m):
    return ((x + m - 1) // m) * m


def attention_dot(last_hidden, encoder_outputs, seq_len=None, *, block_b=None):
    """Pallas equivalent of Attention(method='dot').forward(...)."""
    B, T, H = encoder_outputs.shape
    assert last_hidden.shape == (B, H)
    out_dtype = jnp.result_type(last_hidden.dtype, encoder_outputs.dtype)

    # ---- choose the batch tile --------------------------------------------
    itemsize = jnp.dtype(encoder_outputs.dtype).itemsize
    row_bytes = max(T * H * itemsize, 1)
    b8 = _round_up(B, 8)
    if block_b is None:
        target_bytes = 8 * 1024 * 1024            # ~8 MiB encoder tile
        block_b = max(8, min(1024, target_bytes // row_bytes))
    block_b = max(8, (int(block_b) // 8) * 8)     # sublane-aligned tile
    block_b = min(block_b, b8)                    # don't over-pad tiny batches
    if b8 >= 16:
        # keep >=2 grid steps so the "parallel" batch axis feeds both v7x TCs
        block_b = min(block_b, max(8, ((b8 // 2) // 8) * 8))
    B_pad = _round_up(B, block_b)
    grid = (B_pad // block_b,)

    # ---- pad batch so the grid tiles evenly --------------------------------
    lh = last_hidden
    enc = encoder_outputs
    if B_pad != B:
        pad = B_pad - B
        lh = jnp.pad(lh, ((0, pad), (0, 0)))
        enc = jnp.pad(enc, ((0, pad), (0, 0), (0, 0)))
    lh3 = lh.reshape(B_pad, 1, H)                 # free reshape in XLA

    # ---- VMEM budget: double-buffered input/output tiles, no f32 copies ----
    enc_tile = block_b * T * H * itemsize
    hid_tile = block_b * H * itemsize
    out_tile = block_b * T * max(jnp.dtype(out_dtype).itemsize, 4)
    vmem_limit = int(min(48 << 20,                # headroom on v7x's 64 MiB VMEM
                         max(16 << 20,
                             2 * enc_tile + 2 * hid_tile + 2 * out_tile + (8 << 20))))
    cparams = pltpu.CompilerParams(
        dimension_semantics=("parallel",),        # shard batch grid across TCs (v7x)
        vmem_limit_bytes=vmem_limit,
    )

    if seq_len is None:
        # -------------------- unmasked path (no iota / no mask work) -------
        grid_spec = pltpu.PrefetchScalarGridSpec(
            num_scalar_prefetch=0,
            grid=grid,
            in_specs=[
                pl.BlockSpec((block_b, 1, H), lambda b: (b, 0, 0)),   # last_hidden
                pl.BlockSpec((block_b, T, H), lambda b: (b, 0, 0)),   # encoder_outputs
            ],
            out_specs=pl.BlockSpec((block_b, 1, T), lambda b: (b, 0, 0)),
        )
        out = pl.pallas_call(
            _attn_dot_kernel,
            out_shape=jax.ShapeDtypeStruct((B_pad, 1, T), out_dtype),
            grid_spec=grid_spec,
            compiler_params=cparams,
        )(lh3, enc)
        out = out.reshape(B_pad, T)
        return out[:B] if B_pad != B else out

    # ------------------------ masked path -----------------------------------
    seq = jnp.asarray(seq_len, dtype=jnp.int32).reshape(-1)
    assert seq.shape[0] == B
    # Global max over the *real* batch, computed once in the wrapper and passed
    # as an SMEM scalar (stays correct when the batch axis is tiled).
    max_len = jnp.max(seq).astype(jnp.int32).reshape(1)
    if B_pad != B:
        # padded rows: seq_len = T  ->  never masked, uniform softmax, dropped.
        seq = jnp.concatenate([seq, jnp.full((B_pad - B,), T, dtype=jnp.int32)])
    seq3d = seq.reshape(B_pad, 1, 1)

    grid_spec = pltpu.PrefetchScalarGridSpec(
        num_scalar_prefetch=1,                    # max_len -> SMEM scalar
        grid=grid,
        in_specs=[
            pl.BlockSpec((block_b, 1, 1), lambda b, ml: (b, 0, 0)),   # seq_len
            pl.BlockSpec((block_b, 1, H), lambda b, ml: (b, 0, 0)),   # last_hidden
            pl.BlockSpec((block_b, T, H), lambda b, ml: (b, 0, 0)),   # encoder_outputs
        ],
        out_specs=pl.BlockSpec((block_b, 1, T), lambda b, ml: (b, 0, 0)),
    )
    out = pl.pallas_call(
        _attn_dot_masked_kernel,
        out_shape=jax.ShapeDtypeStruct((B_pad, 1, T), out_dtype),
        grid_spec=grid_spec,
        compiler_params=cparams,
    )(max_len, seq3d, lh3, enc)
    out = out.reshape(B_pad, T)
    return out[:B] if B_pad != B else out


# --------------------------------------------------------------------------
# Pure-JAX reference (mirrors the PyTorch forward, method='dot')
# --------------------------------------------------------------------------
def _reference(last_hidden, encoder_outputs, seq_len=None):
    scores = jnp.einsum("bth,bh->bt",
                        encoder_outputs.astype(jnp.float32),
                        last_hidden.astype(jnp.float32))
    if seq_len is not None:
        B, T = scores.shape
        seq = jnp.asarray(seq_len, dtype=jnp.int32).reshape(B, 1)
        max_len = jnp.max(seq)
        t_idx = jnp.arange(T)[None, :]
        mask = (t_idx >= seq) & (seq < max_len)
        scores = jnp.where(mask, -jnp.inf, scores)
    return jax.nn.softmax(scores, axis=-1)


if __name__ == "__main__":
    key = jax.random.PRNGKey(0)
    k1, k2, k3, k4 = jax.random.split(key, 4)

    # --- small shapes matching the module (B=2, T=8, H=32) -----------------
    B, T, H = 2, 8, 32
    last_hidden = jax.random.normal(k1, (B, H), dtype=jnp.float32)
    encoder_outputs = jax.random.normal(k2, (B, T, H), dtype=jnp.float32)
    seq_len = jnp.array([T, 5], dtype=jnp.int32)

    out = jax.block_until_ready(attention_dot(last_hidden, encoder_outputs, seq_len))
    ref = _reference(last_hidden, encoder_outputs, seq_len)
    assert out.shape == (B, T)
    assert jnp.allclose(out, ref, atol=2e-3, rtol=2e-3), "masked path mismatch"
    assert jnp.allclose(jnp.sum(out, axis=-1), 1.0, atol=2e-3)

    # --- seq_len=None path (mask code skipped entirely) --------------------
    out_nm = jax.block_until_ready(attention_dot(last_hidden, encoder_outputs, None))
    ref_nm = _reference(last_hidden, encoder_outputs, None)
    assert jnp.allclose(out_nm, ref_nm, atol=2e-3, rtol=2e-3), "unmasked path mismatch"
    assert jnp.allclose(jnp.sum(out_nm, axis=-1), 1.0, atol=2e-3)

    # --- multi-tile grid (B=16 -> two batch tiles of 8) ---------------------
    B2 = 16
    lh2 = jax.random.normal(k3, (B2, H), dtype=jnp.float32)
    enc2 = jax.random.normal(k4, (B2, T, H), dtype=jnp.float32)
    seq2 = jnp.array([8, 5, 3, 8, 7, 2, 8, 6, 4, 8, 1, 5, 8, 8, 3, 7], dtype=jnp.int32)
    out2 = jax.block_until_ready(attention_dot(lh2, enc2, seq2, block_b=8))
    ref2 = _reference(lh2, enc2, seq2)
    assert jnp.allclose(out2, ref2, atol=2e-3, rtol=2e-3), "tiled path mismatch"
    assert jnp.allclose(jnp.sum(out2, axis=-1), 1.0, atol=2e-3)

    # --- bf16 streaming path (halves the dominant HBM stream) --------------
    out_bf = jax.block_until_ready(
        attention_dot(lh2.astype(jnp.bfloat16), enc2.astype(jnp.bfloat16),
                      seq2, block_b=8))
    assert out_bf.shape == (B2, T)
    assert jnp.allclose(jnp.sum(out_bf.astype(jnp.float32), axis=-1), 1.0, atol=2e-2)

    print("KERNEL_OK")
</pallas_src>

<mosaic_0001>
module attributes {stable_mosaic.version = 11 : i64} {
  func.func @_attn_dot_masked_kernel(%arg0: i32, %arg1: memref<1xi32, #tpu.memory_space<smem>>, %arg2: memref<8x1x1xi32, #tpu.memory_space<vmem>>, %arg3: memref<8x1x32xf32, #tpu.memory_space<vmem>>, %arg4: memref<8x8x32xf32, #tpu.memory_space<vmem>>, %arg5: memref<8x1x8xf32, #tpu.memory_space<vmem>>) attributes {dimension_semantics = [#tpu.dimension_semantics<parallel>], iteration_bounds = array<i64: 1>, scalar_prefetch = 1 : i64, scratch_operands = 0 : i64, tpu.core_type = #tpu.core_type<tc>, window_params = [{transform_indices = @transform_0, window_bounds = array<i64: 8, 1, 1>}, {transform_indices = @transform_1, window_bounds = array<i64: 8, 1, 32>}, {transform_indices = @transform_2, window_bounds = array<i64: 8, 8, 32>}, {transform_indices = @transform_3, window_bounds = array<i64: 8, 1, 8>}]} {
    %c0 = arith.constant 0 : index
    %c0_0 = arith.constant 0 : index
    %c0_1 = arith.constant 0 : index
    %0 = vector.load %arg3[%c0, %c0_0, %c0_1] : memref<8x1x32xf32, #tpu.memory_space<vmem>>, vector<8x1x32xf32>
    %c0_2 = arith.constant 0 : index
    %c0_3 = arith.constant 0 : index
    %c0_4 = arith.constant 0 : index
    %1 = vector.load %arg4[%c0_2, %c0_3, %c0_4] : memref<8x8x32xf32, #tpu.memory_space<vmem>>, vector<8x8x32xf32>
    %cst = arith.constant dense<0.000000e+00> : vector<8x1x8xf32>
    %2 = tpu.matmul %0, %1, %cst {dimension_numbers = #tpu.dot_dimension_numbers<[2], [2], [1], [1], [0, 0, 0, 1, 1, 1], [0], [0]>, precision = #tpu.contract_precision<fp32>} : vector<8x1x32xf32>, vector<8x8x32xf32>, vector<8x1x8xf32> -> vector<8x1x8xf32>
    %c0_5 = arith.constant 0 : index
    %c0_6 = arith.constant 0 : index
    %c0_7 = arith.constant 0 : index
    %3 = vector.load %arg2[%c0_5, %c0_6, %c0_7] : memref<8x1x1xi32, #tpu.memory_space<vmem>>, vector<8x1x1xi32>
    %c0_8 = arith.constant 0 : index
    %4 = memref.load %arg1[%c0_8] : memref<1xi32, #tpu.memory_space<smem>>
    %5 = tpu.iota {dimensions = array<i32: 2>} : vector<8x1x8xi32>
    %6 = vector.broadcast %3 : vector<8x1x1xi32> to vector<8x1x8xi32>
    %7 = arith.cmpi sge, %5, %6 : vector<8x1x8xi32>
    %8 = vector.broadcast %4 : i32 to vector<8x1x1xi32>
    %9 = arith.cmpi slt, %3, %8 : vector<8x1x1xi32>
    %10 = vector.broadcast %9 : vector<8x1x1xi1> to vector<8x1x8xi1>
    %11 = arith.andi %7, %10 : vector<8x1x8xi1>
    %cst_9 = arith.constant 0xFF800000 : f32
    %12 = vector.broadcast %cst_9 : f32 to vector<8x1x8xf32>
    %13 = arith.select %11, %12, %2 : vector<8x1x8xi1>, vector<8x1x8xf32>
    %cst_10 = arith.constant dense<0xFF800000> : vector<8x1xf32>
    %14 = vector.multi_reduction <maximumf>, %13, %cst_10 [2] : vector<8x1x8xf32> to vector<8x1xf32>
    %15 = vector.shape_cast %14 : vector<8x1xf32> to vector<8x1x1xf32>
    %16 = vector.broadcast %15 : vector<8x1x1xf32> to vector<8x1x8xf32>
    %17 = arith.subf %13, %16 : vector<8x1x8xf32>
    %18 = math.exp %17 : vector<8x1x8xf32>
    %cst_11 = arith.constant dense<0.000000e+00> : vector<8x1xf32>
    %19 = vector.multi_reduction <add>, %18, %cst_11 [2] : vector<8x1x8xf32> to vector<8x1xf32>
    %20 = vector.shape_cast %19 : vector<8x1xf32> to vector<8x1x1xf32>
    %21 = vector.broadcast %20 : vector<8x1x1xf32> to vector<8x1x8xf32>
    %22 = arith.divf %18, %21 : vector<8x1x8xf32>
    %c0_12 = arith.constant 0 : index
    %c0_13 = arith.constant 0 : index
    %c0_14 = arith.constant 0 : index
    %23 = vector.load %arg5[%c0_12, %c0_13, %c0_14] : memref<8x1x8xf32, #tpu.memory_space<vmem>>, vector<8x1x8xf32>
    tpu.vector_store %arg5[%c0_12, %c0_13, %c0_14], %22 {strides = array<i32>} : memref<8x1x8xf32, #tpu.memory_space<vmem>>, vector<8x1x8xf32>,
    return
  }
  func.func @transform_0(%arg0: i32, %arg1: memref<1xi32, #tpu.memory_space<smem>>) -> (i32, i32, i32) {
    %c0_i32 = arith.constant 0 : i32
    %c0_i32_0 = arith.constant 0 : i32
    %c0_i32_1 = arith.constant 0 : i32
    return %arg0, %c0_i32, %c0_i32_0 : i32, i32, i32
  }
  func.func @transform_1(%arg0: i32, %arg1: memref<1xi32, #tpu.memory_space<smem>>) -> (i32, i32, i32) {
    %c0_i32 = arith.constant 0 : i32
    %c0_i32_0 = arith.constant 0 : i32
    %c0_i32_1 = arith.constant 0 : i32
    return %arg0, %c0_i32, %c0_i32_0 : i32, i32, i32
  }
  func.func @transform_2(%arg0: i32, %arg1: memref<1xi32, #tpu.memory_space<smem>>) -> (i32, i32, i32) {
    %c0_i32 = arith.constant 0 : i32
    %c0_i32_0 = arith.constant 0 : i32
    %c0_i32_1 = arith.constant 0 : i32
    return %arg0, %c0_i32, %c0_i32_0 : i32, i32, i32
  }
  func.func @transform_3(%arg0: i32, %arg1: memref<1xi32, #tpu.memory_space<smem>>) -> (i32, i32, i32) {
    %c0_i32 = arith.constant 0 : i32
    %c0_i32_0 = arith.constant 0 : i32
    %c0_i32_1 = arith.constant 0 : i32
    return %arg0, %c0_i32, %c0_i32_0 : i32, i32, i32
  }
}

</mosaic_0001>

<bundles_post_ra>
// kernel: tpu_custom_call.1
= control target key start
LH: loop header
LB: loop body
LE: loop exit
PB: predicated region body
PF: predicated region fallthrough
CT: control target
= control target key end

     0   :  { %10 = vsyncpa [#allocation5], 0  ;;  %s2080_s0 = inlined_call_operand.<no memory space> [shape: s32[1], index: 0, kind: input, shape index: {}]   ;;  %s2081_s1 = inlined_call_operand.vmem [shape: s32[8,1,1], index: 1, kind: input, shape index: {}]   ;;  %s2082_s2 = inlined_call_operand.vmem [shape: f32[8,1,32], index: 2, kind: input, shape index: {}]   ;;  %s2083_s3 = inlined_call_operand.hbm [shape: f32[8,8,32], index: 3, kind: input, shape index: {}]   ;;  %s2084_s4 = inlined_call_operand.hbm [shape: f32[8,1,8], index: 4, kind: output, shape index: {}]  }
   0x1   :  { %11 = vsyncpa [#allocation6], 0  ;;  %s20_s17 = sshll.u32 %s2083_s3, 4  ;;  %s1704_s18 = smov [#allocation4]   ;;  %s21_s17 = int_to_ptr.hbm [resolvable:$true] %s20_s17 }
   0x2   :  { %s22_s19 = sshll.u32 %s1704_s18, 4  ;;  %s1705_s20 = smov 128   ;;  %s23_s19 = int_to_ptr.vmem [resolvable:$true] %s22_s19 }
   0x3   :  { %s1706_s21 = smov 8  }
   0x4   :  { %28 = dma.hbm_to_vmem [thread:$0]  %s21_s17, 1024, %s23_s19, [#allocation5], %s1705_s20, %s1705_s20, %s1706_s21  }
   0x5   :  { %1700 = dma.done.wait [#allocation5], 1024  }
   0x6   :  { %1701 = vsyncadd [#allocation5], 4294966272  ;;  %v1707_v0 = vmov 0   ;;  %vm49_vm0 = vcmask 261120   ;;  %v41_v1 = vld [vmem:[#allocation4] sm:$0xff]  ;;  %v42_v3 = vld [vmem:[#allocation4 + $0x8] sm:$0xff]  ;;  %v1834_v52 = vstv %s2080_s0 }
   0x7   :  { %1617 = vset.pattern.permute.xlu0 %v1707_v0  ;;  %1618 = vset.pattern.permute.xlu1 %v1707_v0  ;;  %v33_v2 = vld [vmem:[%s2082_s2] sm:$0x1]  ;;  %v54_v4 = vsel %vm49_vm0, %v41_v1, 0  ;;  %v206_v6 = vsel %vm49_vm0, %v42_v3, 0  ;;  %v34_v7 = vld [vmem:[%s2082_s2 + $0x1] sm:$0x1] }
   0x8   :  { %1619 = vset.pattern.permute.xlu2 %v1707_v0  ;;  %v51_v5 = vsel %vm49_vm0, %v33_v2, 0  ;;  %v43_v8 = vld [vmem:[#allocation4 + $0x10] sm:$0xff]  ;;  %v71_v9 = vand.u32 4294901760, %v54_v4  ;;  %v223_v11 = vand.u32 4294901760, %v206_v6  ;;  %v203_v12 = vsel %vm49_vm0, %v34_v7, 0  ;;  %v44_v21 = vld [vmem:[#allocation4 + $0x18] sm:$0xff] }
   0x9   :  { %v1751_v10 = vand.u32 4294901760, %v51_v5  ;;  %v1757_v13 = vld [vmem:[%s2081_s1] sm:$0x1]  ;;  %v1759_v14 = vand.u32 4294901760, %v203_v12  ;;  %v358_v15 = vsel %vm49_vm0, %v43_v8, 0  ;;  %v510_v23 = vsel %vm49_vm0, %v44_v21, 0 }
   0xa   :  { %1278 = vperm.xlu0 %1617, %v1757_v13   ;;  %v1766_v16 = vld [vmem:[%s2081_s1 + $0x2] sm:$0x1]  ;;  %v98_v17 = vsub.f32 %v54_v4, %v71_v9  ;;  %148 = vmatpush.xpose.msra.mxu3 %v71_v9  ;;  %v250_v19 = vsub.f32 %v206_v6, %v223_v11  ;;  %v1769_v20 = vand.u32 4294901760, %v358_v15  ;;  %v1780_v29 = vand.u32 4294901760, %v510_v23  ;;  %v1785_v30 = vld [vmem:[%s2081_s1 + $0x4] sm:$0x1] }
   0xb   :  { %72 = vmatpush.xpose.msra.mxu0 %v71_v9  ;;  %v74_v18 = vsub.f32 %v51_v5, %v1751_v10  ;;  %v1772_v22 = vsub.f32 %v203_v12, %v1759_v14  ;;  %1286 = vperm.xlu1 %1618, %v1766_v16   ;;  %v1267_v34 = vld [vmem:[%s2081_s1 + $0x1] sm:$0x1]  ;;  %v35_v40 = vld [vmem:[%s2082_s2 + $0x2] sm:$0x1]  ;;  %v1804_v42 = vld [vmem:[%s2081_s1 + $0x3] sm:$0x1]  ;;  %vm1318_vm1 = vcmp.lt.s32.totalorder %v1757_v13, %v1834_v52 }
   0xc   :  { %125 = vmatpush.xpose.msra.mxu2 %v98_v17  ;;  %v99_v25 = vand.u32 4294901760, %v98_v17  ;;  %v251_v26 = vand.u32 4294901760, %v250_v19  ;;  %v1778_v28 = vsub.f32 %v358_v15, %v1769_v20  ;;  %v1794_v36 = vsub.f32 %v510_v23, %v1780_v29  ;;  %1294 = vperm.xlu2 %1619, %v1785_v30   ;;  %v36_v46 = vld [vmem:[%s2082_s2 + $0x3] sm:$0x1]  ;;  %v1816_v47 = vld [vmem:[%s2081_s1 + $0x5] sm:$0x1] }
   0xd   :  { %v75_v24 = vand.u32 4294901760, %v74_v18  ;;  %v227_v27 = vand.u32 4294901760, %v1772_v22  ;;  %v355_v44 = vsel %vm49_vm0, %v35_v40, 0  ;;  %v1825_v50 = vld [vmem:[%s2081_s1 + $0x6] sm:$0x1]  ;;  %v507_v53 = vsel %vm49_vm0, %v36_v46, 0 }
   0xe   :  { %v100_v32 = vsub.f32 %v98_v17, %v99_v25  ;;  %v252_v33 = vsub.f32 %v250_v19, %v251_v26  ;;  %v403_v41 = vand.u32 4294901760, %v1778_v28  ;;  %v555_v45 = vand.u32 4294901760, %v1794_v36  ;;  %v1847_v56 = vld [vmem:[%s2081_s1 + $0x7] sm:$0x1]  ;;  %v46_v61 = vld [vmem:[#allocation4 + $0x28] sm:$0xff]  ;;  %s1597_s29 = sshll.u32 %s2084_s4, 4  ;;  %s1598_s29 = int_to_ptr.hbm [resolvable:$true] %s1597_s29 }
   0xf   :  { %152 = vmatmul.f32.vlgmr.msra.gmra.mxu3 %v75_v24  ;;  %v76_v31 = vsub.f32 %v74_v18, %v75_v24  ;;  %174 = vmatpush.xpose.msrb.mxu0 %v99_v25  ;;  %v228_v35 = vsub.f32 %v1772_v22, %v227_v27  ;;  %v1820_v49 = vand.u32 4294901760, %v355_v44  ;;  %v1850_v58 = vand.u32 4294901760, %v507_v53  ;;  %v45_v59 = vld [vmem:[#allocation4 + $0x20] sm:$0xff]  ;;  %s1709_s30 = smov 16   ;;  %s1710_s5 = smov 1  }
  0x10   :  { %224 = vmatpush.xpose.msrb.mxu2 %v223_v11  ;;  %v101_v38 = vand.u32 4294901760, %v100_v32  ;;  %v253_v39 = vand.u32 4294901760, %v252_v33  ;;  %v404_v48 = vsub.f32 %v1778_v28, %v403_v41  ;;  %v556_v51 = vsub.f32 %v1794_v36, %v555_v45 }
  0x11   :  { %128 = vmatmul.f32.vlgmr.msra.gmra.mxu2 %v74_v18  ;;  %v77_v37 = vand.u32 4294901760, %v76_v31  ;;  %v229_v43 = vand.u32 4294901760, %v228_v35  ;;  %v378_v55 = vsub.f32 %v355_v44, %v1820_v49  ;;  %vm1319_vm2 = vcmp.lt.s32.totalorder %v1267_v34, %v1834_v52 }
  0x12   :  { %1282 = vperm.xlu0 %1617, %v1267_v34   ;;  %102 = vmatpush.xpose.msra.mxu1 %v101_v38  ;;  %v405_v54 = vand.u32 4294901760, %v404_v48  ;;  %v557_v57 = vand.u32 4294901760, %v556_v51  ;;  %v1326_v60 = vsel %vm1318_vm1, 1, %v1707_v0  ;;  %v1327_v63 = vsel %vm1319_vm2, 1, %v1707_v0 }
  0x13   :  { %78 = vmatmul.f32.vlgmr.msra.gmra.mxu0 %v77_v37  ;;  %254 = vmatpush.xpose.msrb.mxu3 %v253_v39  ;;  %v379_v62 = vand.u32 4294901760, %v378_v55  ;;  %vm1320_vm3 = vcmp.lt.s32.totalorder %v1766_v16, %v1834_v52  ;;  %v1862_v1 = vsub.f32 %v507_v53, %v1850_v58  ;;  %v662_v2 = vsel %vm49_vm0, %v45_v59, 0 }
  0x14   :  { %326 = vmatpush.xpose.msra.mxu2 %v251_v26  ;;  %277 = vmatpush.xpose.msra.mxu0 %v250_v19  ;;  %v814_v3 = vsel %vm49_vm0, %v46_v61, 0  ;;  %v1868_v5 = vand.u32 4294901760, %v662_v2  ;;  %v1328_v6 = vsel %vm1320_vm3, 1, %v1707_v0  ;;  %vm1322_vm4 = vcmp.lt.s32.totalorder %v1785_v30, %v1834_v52  ;;  %v38_v19 = vld [vmem:[%s2082_s2 + $0x5] sm:$0x1]  ;;  %v48_v30 = vld [vmem:[#allocation4 + $0x38] sm:$0xff] }
  0x15   :  { %104 = vmatmul.f32.vlgmr.msra.gmra.mxu1 %v1751_v10  ;;  %1290 = vperm.xlu1 %1618, %v1804_v42   ;;  %v380_v4 = vsub.f32 %v378_v55, %v379_v62  ;;  %v531_v7 = vand.u32 4294901760, %v1862_v1  ;;  %v1872_v8 = vand.u32 4294901760, %v814_v3  ;;  %v1330_v13 = vsel %vm1322_vm4, 1, %v1707_v0 }
  0x16   :  { %196 = vmatpush.xpose.msrb.mxu1 %v71_v9  ;;  %1298 = vperm.xlu2 %1619, %v1816_v47   ;;  %vm1325_vm5 = vcmp.lt.s32.totalorder %v1847_v56, %v1834_v52  ;;  %v811_v23 = vsel %vm49_vm0, %v38_v19, 0  ;;  %vm1323_vm6 = vcmp.lt.s32.totalorder %v1816_v47, %v1834_v52  ;;  %v1118_v34 = vsel %vm49_vm0, %v48_v30, 0 }
  0x17   :  { %348 = vmatpush.xpose.msra.mxu3 %v223_v11  ;;  %v381_v9 = vand.u32 4294901760, %v380_v4  ;;  %v1885_v12 = vsub.f32 %v814_v3, %v1872_v8  ;;  %v1333_v24 = vsel %vm1325_vm5, 1, %v1707_v0  ;;  %v1331_v35 = vsel %vm1323_vm6, 1, %v1707_v0 }
  0x18   :  { %256 = vmatmul.f32.vlgmr.msrb.gmra.mxu3 %v1759_v14  ;;  %v1929_v39 = vand.u32 4294901760, %v1118_v34  ;;  %vm1321_vm7 = vcmp.lt.s32.totalorder %v1804_v42, %v1834_v52  ;;  %v40_v42 = vld [vmem:[%s2082_s2 + $0x7] sm:$0x1]  ;;  %vm1324_vm8 = vcmp.lt.s32.totalorder %v1825_v50, %v1834_v52  ;;  %vm1390_vm14 = vcmask 57344  }
  0x19   :  { %230 = vmatmul.f32.vlgmr.msrb.gmra.mxu2 %v229_v43  ;;  %v859_v18 = vand.u32 4294901760, %v1885_v12  ;;  %v1329_v46 = vsel %vm1321_vm7, 1, %v1707_v0 }
  0x1a   :  { %300 = vmatpush.xpose.msra.mxu1 %v223_v11  ;;  %429 = vmatpush.xpose.msrb.mxu2 %v1778_v28  ;;  %v532_v11 = vsub.f32 %v1862_v1, %v531_v7  ;;  %v1913_v28 = vand.u32 4294901760, %v811_v23  ;;  %v1162_v44 = vsub.f32 %v1118_v34, %v1929_v39 }
  0x1b   :  { %452 = vmatpush.xpose.msrb.mxu3 %v1769_v20  ;;  %1302 = vperm.xlu0 %1617, %v1825_v50  }
  0x1c   :  { %176 = vmatmul.f32.vlgmr.msrb.gmra.mxu0 %v1751_v10  ;;  %v533_v16 = vand.u32 4294901760, %v532_v11  ;;  %v1919_v32 = vsub.f32 %v811_v23, %v1913_v28  ;;  %v1163_v51 = vand.u32 4294901760, %v1162_v44 }
  0x1d   :  { %376 = vmatpush.xpose.msrb.mxu0 %v1769_v20  ;;  %198 = vmatmul.f32.vlgmr.msrb.gmra.mxu1 %v1751_v10  ;;  %v706_v10 = vsub.f32 %v662_v2, %v1868_v5 }
  0x1e   :  { %1306 = vperm.xlu1 %1618, %v1847_v56   ;;  %406 = vmatpush.xpose.msrb.mxu1 %v405_v54  ;;  %v835_v38 = vand.u32 4294901760, %v1919_v32  ;;  %v1115_v56 = vsel %vm49_vm0, %v40_v42, 0 }
  0x1f   :  { %1335 = vperm.xlu2 %1619, %v1326_v60   ;;  %v707_v15 = vand.u32 4294901760, %v706_v10  ;;  %v1137_v61 = vand.u32 4294901760, %v1115_v56 }
  0x20   :  { %350 = vmatmul.f32.vlgmr.msra.gmra.mxu3 %v1759_v14  ;;  %v836_v43 = vsub.f32 %v1919_v32, %v835_v38 }
  0x21   :  { %328 = vmatmul.f32.vlgmr.msra.gmra.mxu2 %v1759_v14  ;;  %558 = vmatpush.xpose.msra.mxu3 %v557_v57  ;;  %v37_v14 = vld [vmem:[%s2082_s2 + $0x4] sm:$0x1]  ;;  %v1332_v57 = vsel %vm1324_vm8, 1, %v1707_v0  ;;  %v1138_v50 = vsub.f32 %v1115_v56, %v1137_v61 }
  0x22   :  { %528 = vmatpush.xpose.msra.mxu2 %v1780_v29  ;;  %v659_v17 = vsel %vm49_vm0, %v37_v14, 0  ;;  %v837_v48 = vand.u32 4294901760, %v836_v43 }
  0x23   :  { %1339 = vperm.xlu0 %1617, %v1327_v63   ;;  %v1902_v21 = vand.u32 4294901760, %v659_v17  ;;  %v1139_v52 = vand.u32 4294901760, %v1138_v50 }
  0x24   :  { %280 = vmatmul.f32.vlgmr.msra.gmra.mxu0 %v1772_v22  ;;  %v860_v22 = vsub.f32 %v1885_v12, %v859_v18 }
  0x25   :  { %478 = vmatpush.xpose.msra.mxu0 %v403_v41  ;;  %304 = vmatmul.f32.vlgmr.msra.gmra.mxu1 %v227_v27  ;;  %v682_v26 = vsub.f32 %v659_v17, %v1902_v21 }
  0x26   :  { %1343 = vperm.xlu1 %1618, %v1328_v6   ;;  %500 = vmatpush.xpose.msra.mxu1 %v1769_v20  ;;  %v708_v20 = vsub.f32 %v706_v10, %v707_v15  ;;  %v861_v27 = vand.u32 4294901760, %v860_v22 }
  0x27   :  { %v683_v31 = vand.u32 4294901760, %v682_v26  ;;  %1347 = vperm.xlu2 %1619, %v1329_v46  }
  0x28   :  { %456 = vmatmul.f32.vlgmr.msrb.gmra.mxu3 %v379_v62  ;;  %v709_v25 = vand.u32 4294901760, %v708_v20 }
  0x29   :  { %432 = vmatmul.f32.vlgmr.msrb.gmra.mxu2 %v378_v55  ;;  %652 = vmatpush.xpose.msrb.mxu3 %v1780_v29  ;;  %v1164_v55 = vsub.f32 %v1162_v44, %v1163_v51 }
  0x2a   :  { %630 = vmatpush.xpose.msrb.mxu2 %v555_v45  ;;  %v39_v45 = vld [vmem:[%s2082_s2 + $0x6] sm:$0x1]  ;;  %s1708_s2 = smov [#allocation7]  }
  0x2b   :  { %1351 = vperm.xlu0 %1617, %v1330_v13   ;;  %v1165_v60 = vand.u32 4294901760, %v1164_v55  ;;  %s1595_s26 = sshll.u32 %s1708_s2, 4  ;;  %s1596_s26 = int_to_ptr.vmem [resolvable:$true] %s1595_s26 }
  0x2c   :  { %382 = vmatmul.f32.vlgmr.msrb.gmra.mxu0 %v381_v9  ;;  %v1275_v9 = vlaneseq }
  0x2d   :  { %581 = vmatpush.xpose.msrb.mxu0 %v1794_v36  ;;  %408 = vmatmul.f32.vlgmr.msrb.gmra.mxu1 %v1820_v49  ;;  %v684_v36 = vsub.f32 %v682_v26, %v683_v31 }
  0x2e   :  { %604 = vmatpush.xpose.msrb.mxu1 %v1780_v29  ;;  %v47_v29 = vld [vmem:[#allocation4 + $0x30] sm:$0xff]  ;;  %1355 = vperm.xlu1 %1618, %v1331_v35   ;;  %v1971_v11 = vand.u32 127, %v1275_v9 }
  0x2f   :  { %v966_v33 = vsel %vm49_vm0, %v47_v29, 0  ;;  %v685_v40 = vand.u32 4294901760, %v684_v36  ;;  %1359 = vperm.xlu2 %1619, %v1332_v57  }
  0x30   :  { %560 = vmatmul.f32.vlgmr.msra.gmra.mxu3 %v1850_v58  ;;  %v983_v37 = vand.u32 4294901760, %v966_v33 }
  0x31   :  { %534 = vmatmul.f32.vlgmr.msra.gmra.mxu2 %v533_v16  ;;  %756 = vmatpush.xpose.msra.mxu3 %v1868_v5 }
  0x32   :  { %733 = vmatpush.xpose.msra.mxu2 %v706_v10  ;;  %v1010_v41 = vsub.f32 %v966_v33, %v983_v37 }
  0x33   :  { %1363 = vperm.xlu0 %1617, %v1333_v24  }
  0x34   :  { %480 = vmatmul.f32.vlgmr.msra.gmra.mxu0 %v1820_v49  ;;  %v1011_v47 = vand.u32 4294901760, %v1010_v41 }
  0x35   :  { %680 = vmatpush.xpose.msra.mxu0 %v1868_v5  ;;  %502 = vmatmul.f32.vlgmr.msra.gmra.mxu1 %v1820_v49  ;;  %v963_v49 = vsel %vm49_vm0, %v39_v45, 0 }
  0x36   :  { %710 = vmatpush.xpose.msra.mxu1 %v709_v25  ;;  %v1012_v53 = vsub.f32 %v1010_v41, %v1011_v47  ;;  %v985_v54 = vand.u32 4294901760, %v963_v49 }
  0x38   :  { %654 = vmatmul.f32.vlgmr.msrb.gmra.mxu3 %v1850_v58  ;;  %v986_v59 = vsub.f32 %v963_v49, %v985_v54 }
  0x39   :  { %632 = vmatmul.f32.vlgmr.msrb.gmra.mxu2 %v1850_v58  ;;  %862 = vmatpush.xpose.msrb.mxu3 %v861_v27  ;;  %v1013_v58 = vand.u32 4294901760, %v1012_v53 }
  0x3a   :  { %832 = vmatpush.xpose.msrb.mxu2 %v1872_v8  ;;  %v987_v62 = vand.u32 4294901760, %v986_v59 }
  0x3c   :  { %584 = vmatmul.f32.vlgmr.msrb.gmra.mxu0 %v1862_v1  ;;  %v988_v0 = vsub.f32 %v986_v59, %v987_v62  ;;  %v1140_v1 = vsub.f32 %v1138_v50, %v1139_v52 }
  0x3d   :  { %782 = vmatpush.xpose.msrb.mxu0 %v707_v15  ;;  %608 = vmatmul.f32.vlgmr.msrb.gmra.mxu1 %v531_v7 }
  0x3e   :  { %804 = vmatpush.xpose.msrb.mxu1 %v1868_v5  ;;  %v989_v63 = vand.u32 4294901760, %v988_v0  ;;  %v1141_v2 = vand.u32 4294901760, %v1140_v1 }
  0x40   :  { %760 = vmatmul.f32.vlgmr.msra.gmra.mxu3 %v683_v31 }
  0x41   :  { %736 = vmatmul.f32.vlgmr.msra.gmra.mxu2 %v682_v26  ;;  %956 = vmatpush.xpose.msra.mxu3 %v1872_v8 }
  0x42   :  { %934 = vmatpush.xpose.msra.mxu2 %v859_v18 }
  0x44   :  { %686 = vmatmul.f32.vlgmr.msra.gmra.mxu0 %v685_v40 }
  0x45   :  { %885 = vmatpush.xpose.msra.mxu0 %v1885_v12  ;;  %712 = vmatmul.f32.vlgmr.msra.gmra.mxu1 %v1902_v21 }
  0x46   :  { %908 = vmatpush.xpose.msra.mxu1 %v1872_v8 }
  0x48   :  { %864 = vmatmul.f32.vlgmr.msrb.gmra.mxu3 %v1913_v28 }
  0x49   :  { %838 = vmatmul.f32.vlgmr.msrb.gmra.mxu2 %v837_v48  ;;  %1060 = vmatpush.xpose.msrb.mxu3 %v983_v37 }
  0x4a   :  { %1037 = vmatpush.xpose.msrb.mxu2 %v1010_v41 }
  0x4c   :  { %784 = vmatmul.f32.vlgmr.msrb.gmra.mxu0 %v1902_v21 }
  0x4d   :  { %984 = vmatpush.xpose.msrb.mxu0 %v983_v37  ;;  %806 = vmatmul.f32.vlgmr.msrb.gmra.mxu1 %v1902_v21 }
  0x4e   :  { %1014 = vmatpush.xpose.msrb.mxu1 %v1013_v58 }
  0x50   :  { %958 = vmatmul.f32.vlgmr.msra.gmra.mxu3 %v1913_v28 }
  0x51   :  { %936 = vmatmul.f32.vlgmr.msra.gmra.mxu2 %v1913_v28  ;;  %1166 = vmatpush.xpose.msra.mxu3 %v1165_v60 }
  0x52   :  { %1136 = vmatpush.xpose.msra.mxu2 %v1929_v39 }
  0x54   :  { %888 = vmatmul.f32.vlgmr.msra.gmra.mxu0 %v1919_v32 }
  0x55   :  { %1086 = vmatpush.xpose.msra.mxu0 %v1011_v47  ;;  %912 = vmatmul.f32.vlgmr.msra.gmra.mxu1 %v835_v38 }
  0x56   :  { %1108 = vmatpush.xpose.msra.mxu1 %v983_v37 }
  0x58   :  { %1064 = vmatmul.f32.vlgmr.msrb.gmra.mxu3 %v987_v62 }
  0x59   :  { %1040 = vmatmul.f32.vlgmr.msrb.gmra.mxu2 %v986_v59  ;;  %1260 = vmatpush.xpose.msrb.mxu3 %v1929_v39 }
  0x5a   :  { %1238 = vmatpush.xpose.msrb.mxu2 %v1163_v51 }
  0x5c   :  { %990 = vmatmul.f32.vlgmr.msrb.gmra.mxu0 %v989_v63 }
  0x5d   :  { %1189 = vmatpush.xpose.msrb.mxu0 %v1162_v44  ;;  %1016 = vmatmul.f32.vlgmr.msrb.gmra.mxu1 %v985_v54 }
  0x5e   :  { %1212 = vmatpush.xpose.msrb.mxu1 %v1929_v39 }
  0x60   :  { %1168 = vmatmul.f32.vlgmr.msra.gmra.mxu3 %v1137_v61 }
  0x61   :  { %1142 = vmatmul.f32.vlgmr.msra.gmra.mxu2 %v1141_v2 }
  0x64   :  { %1088 = vmatmul.f32.vlgmr.msra.gmra.mxu0 %v985_v54 }
  0x65   :  { %1110 = vmatmul.f32.vlgmr.msra.gmra.mxu1 %v985_v54 }
  0x66   :  { %v1963_v4 = vpop.permute.xlu2 %1294 }
  0x68   :  { %1262 = vmatmul.f32.vlgmr.msrb.gmra.mxu3 %v1137_v61 }
  0x69   :  { %1240 = vmatmul.f32.vlgmr.msrb.gmra.mxu2 %v1137_v61 }
  0x6c   :  { %1192 = vmatmul.f32.vlgmr.msrb.gmra.mxu0 %v1138_v50 }
  0x6d   :  { %1216 = vmatmul.f32.vlgmr.msrb.gmra.mxu1 %v1139_v52 }
  0x70   :  { %v1967_v7 = vpop.permute.xlu2 %1298 }
  0x79   :  { %v1336_v16 = vpop.permute.xlu2 %1335 }
  0x7a   :  { %v1337_v24 = vperm.slane %v1336_v16, 0 }
  0x7c   :  { %v1279_v3 = vpop.permute.xlu0 %1278  ;;  %vm1366_vm12 = vcmp.eq.s32.totalorder %v1337_v24, 1 }
  0x7d   :  { %v1965_v5 = vpop.permute.xlu1 %1286  ;;  %v1280_v22 = vperm.slane %v1279_v3, 0 }
  0x7e   :  { %v1288_v56 = vperm.slane %v1965_v5, 0 }
  0x7f   :  { %vm1309_vm11 = vcmp.ge.s32.totalorder %v1971_v11, %v1280_v22 }
  0x80   :  { %vm1374_vm13 = vmand %vm1309_vm11, %vm1366_vm12  ;;  %vm1311_vm2 = vcmp.ge.s32.totalorder %v1971_v11, %v1288_v56 }
  0x81   :  { %v1348_v2 = vpop.permute.xlu2 %1347 }
  0x84   :  { %v1283_v6 = vpop.permute.xlu0 %1282 }
  0x85   :  { %v1284_v37 = vperm.slane %v1283_v6, 0 }
  0x87   :  { %v1969_v8 = vpop.permute.xlu1 %1290  ;;  %vm1310_vm15 = vcmp.ge.s32.totalorder %v1971_v11, %v1284_v37 }
  0x88   :  { %v1292_v6 = vperm.slane %v1969_v8, 0 }
  0x89   :  { %v1360_v56 = vpop.permute.xlu2 %1359 }
  0x8a   :  { %vm1312_vm5 = vcmp.ge.s32.totalorder %v1971_v11, %v1292_v6 }
  0x8d   :  { %v1303_v10 = vpop.permute.xlu0 %1302 }
  0x8e   :  { %v1304_v12 = vperm.slane %v1303_v10, 0  ;;  %v1349_v10 = vperm.slane %v1348_v2, 0 }
  0x90   :  { %vm1974_vm9 = vcmp.ge.s32.totalorder %v1971_v11, %v1304_v12  ;;  %v79_v14 = vpop.f32.mrf.mxu0  ;;  %v1307_v15 = vpop.permute.xlu1 %1306  ;;  %vm1369_vm6 = vcmp.eq.s32.totalorder %v1349_v10, 1 }
  0x91   :  { %v1308_v17 = vperm.slane %v1307_v15, 0  ;;  %vm1377_vm7 = vmand %vm1312_vm5, %vm1369_vm6 }
  0x92   :  { %v153_v18 = vpop.f32.mrf.mxu3  ;;  %v105_v19 = vpop.f32.mrf.mxu1 }
  0x93   :  { %vm1979_vm10 = vcmp.ge.s32.totalorder %v1971_v11, %v1308_v17  ;;  %v106_v23 = vadd.f32 %v105_v19, %v79_v14 }
  0x94   :  { %v129_v20 = vpop.f32.mrf.mxu2 }
  0x95   :  { %v130_v25 = vadd.f32 %v129_v20, %v106_v23  ;;  %v1340_v34 = vpop.permute.xlu0 %1339 }
  0x96   :  { %v1341_v39 = vperm.slane %v1340_v34, 0 }
  0x97   :  { %v154_v26 = vadd.f32 %v153_v18, %v130_v25 }
  0x98   :  { %vm1367_vm0 = vcmp.eq.s32.totalorder %v1341_v39, 1  ;;  %v1344_v49 = vpop.permute.xlu1 %1343 }
  0x99   :  { %v177_v27 = vpop.f32.mrf.mxu0  ;;  %vm1375_vm1 = vmand %vm1310_vm15, %vm1367_vm0  ;;  %v1345_v58 = vperm.slane %v1344_v49, 0 }
  0x9a   :  { %v178_v28 = vadd.f32 %v177_v27, %v154_v26  ;;  %v199_v30 = vpop.f32.mrf.mxu1 }
  0x9b   :  { %v257_v29 = vpop.f32.mrf.mxu3  ;;  %vm1368_vm3 = vcmp.eq.s32.totalorder %v1345_v58, 1 }
  0x9c   :  { %v231_v31 = vpop.f32.mrf.mxu2  ;;  %v200_v32 = vadd.f32 %v199_v30, %v178_v28  ;;  %vm1376_vm4 = vmand %vm1311_vm2, %vm1368_vm3  ;;  %v1296_v28 = vperm.slane %v1963_v4, 0 }
  0x9d   :  { %v258_v33 = vadd.f32 %v257_v29, %v231_v31  ;;  %v1352_v27 = vpop.permute.xlu0 %1351 }
  0x9e   :  { %v1984_v35 = vsel %vm1374_vm13, -inf, %v200_v32  ;;  %v1353_v29 = vperm.slane %v1352_v27, 0  ;;  %vm1313_vm8 = vcmp.ge.s32.totalorder %v1971_v11, %v1296_v28 }
  0x9f   :  { %v1391_v36 = vsel %vm1390_vm14, %v1984_v35, -inf }
  0xa0   :  { %1392 = vmax.xlane.f32.xlu1 %v1391_v36  ;;  %vm1370_vm11 = vcmp.eq.s32.totalorder %v1353_v29, 1 }
  0xa1   :  { %v281_v38 = vpop.f32.mrf.mxu0  ;;  %vm1378_vm12 = vmand %vm1313_vm8, %vm1370_vm11 }
  0xa2   :  { %v282_v40 = vadd.f32 %v281_v38, %v258_v33  ;;  %v305_v43 = vpop.f32.mrf.mxu1 }
  0xa3   :  { %v351_v41 = vpop.f32.mrf.mxu3 }
  0xa4   :  { %v329_v44 = vpop.f32.mrf.mxu2  ;;  %v306_v45 = vadd.f32 %v305_v43, %v282_v40 }
  0xa5   :  { %v1364_v10 = vpop.permute.xlu0 %1363 }
  0xa6   :  { %v330_v46 = vadd.f32 %v329_v44, %v306_v45  ;;  %v1300_v45 = vperm.slane %v1967_v7, 0 }
  0xa8   :  { %v352_v47 = vadd.f32 %v351_v41, %v330_v46  ;;  %v1356_v41 = vpop.permute.xlu1 %1355  ;;  %vm1314_vm13 = vcmp.ge.s32.totalorder %v1971_v11, %v1300_v45 }
  0xa9   :  { %v383_v48 = vpop.f32.mrf.mxu0  ;;  %v1357_v46 = vperm.slane %v1356_v41, 0 }
  0xaa   :  { %v1989_v51 = vsel %vm1375_vm1, -inf, %v352_v47  ;;  %v409_v53 = vpop.f32.mrf.mxu1 }
  0xab   :  { %v457_v42 = vpop.f32.mrf.mxu3  ;;  %v1394_v54 = vsel %vm1390_vm14, %v1989_v51, -inf  ;;  %v410_v57 = vadd.f32 %v409_v53, %v383_v48  ;;  %vm1371_vm15 = vcmp.eq.s32.totalorder %v1357_v46, 1 }
  0xac   :  { %v433_v55 = vpop.f32.mrf.mxu2  ;;  %1395 = vmax.xlane.f32.xlu2 %v1394_v54  ;;  %vm1379_vm0 = vmand %vm1314_vm13, %vm1371_vm15 }
  0xad   :  { %v434_v59 = vadd.f32 %v433_v55, %v410_v57 }
  0xaf   :  { %v458_v60 = vadd.f32 %v457_v42, %v434_v59 }
  0xb1   :  { %v481_v61 = vpop.f32.mrf.mxu0 }
  0xb2   :  { %v482_v62 = vadd.f32 %v481_v61, %v458_v60  ;;  %v503_v0 = vpop.f32.mrf.mxu1 }
  0xb3   :  { %v561_v50 = vpop.f32.mrf.mxu3 }
  0xb4   :  { %v535_v52 = vpop.f32.mrf.mxu2  ;;  %v504_v63 = vadd.f32 %v503_v0, %v482_v62  ;;  %v1361_v62 = vperm.slane %v1360_v56, 0 }
  0xb5   :  { %v562_v1 = vadd.f32 %v561_v50, %v535_v52 }
  0xb6   :  { %v1995_v3 = vsel %vm1376_vm4, -inf, %v504_v63  ;;  %vm1372_vm1 = vcmp.eq.s32.totalorder %v1361_v62, 1 }
  0xb7   :  { %v1397_v5 = vsel %vm1390_vm14, %v1995_v3, -inf  ;;  %vm1380_vm2 = vmand %vm1974_vm9, %vm1372_vm1 }
  0xb8   :  { %1398 = vmax.xlane.f32.xlu0 %v1397_v5 }
  0xb9   :  { %v585_v9 = vpop.f32.mrf.mxu0 }
  0xba   :  { %v586_v12 = vadd.f32 %v585_v9, %v562_v1  ;;  %v609_v15 = vpop.f32.mrf.mxu1 }
  0xbb   :  { %v655_v14 = vpop.f32.mrf.mxu3 }
  0xbc   :  { %v633_v16 = vpop.f32.mrf.mxu2  ;;  %v610_v17 = vadd.f32 %v609_v15, %v586_v12 }
  0xbe   :  { %v634_v18 = vadd.f32 %v633_v16, %v610_v17  ;;  %v1365_v16 = vperm.slane %v1364_v10, 0 }
  0xc0   :  { %v656_v19 = vadd.f32 %v655_v14, %v634_v18  ;;  %vm1373_vm3 = vcmp.eq.s32.totalorder %v1365_v16, 1 }
  0xc1   :  { %v687_v20 = vpop.f32.mrf.mxu0  ;;  %vm1381_vm4 = vmand %vm1979_vm10, %vm1373_vm3 }
  0xc2   :  { %v2001_v22 = vsel %vm1377_vm7, -inf, %v656_v19  ;;  %v713_v24 = vpop.f32.mrf.mxu1 }
  0xc3   :  { %v761_v23 = vpop.f32.mrf.mxu3  ;;  %v1400_v8 = vsel %vm1390_vm14, %v2001_v22, -inf  ;;  %v714_v26 = vadd.f32 %v713_v24, %v687_v20 }
  0xc4   :  { %v737_v25 = vpop.f32.mrf.mxu2  ;;  %1401 = vmax.xlane.f32.xlu2 %v1400_v8 }
  0xc5   :  { %v738_v30 = vadd.f32 %v737_v25, %v714_v26 }
  0xc7   :  { %v762_v31 = vadd.f32 %v761_v23, %v738_v30 }
  0xc9   :  { %v785_v32 = vpop.f32.mrf.mxu0 }
  0xca   :  { %v786_v33 = vadd.f32 %v785_v32, %v762_v31  ;;  %v807_v36 = vpop.f32.mrf.mxu1 }
  0xcb   :  { %v865_v34 = vpop.f32.mrf.mxu3 }
  0xcc   :  { %v839_v37 = vpop.f32.mrf.mxu2  ;;  %v808_v38 = vadd.f32 %v807_v36, %v786_v33 }
  0xcd   :  { %v866_v39 = vadd.f32 %v865_v34, %v839_v37 }
  0xce   :  { %v2007_v40 = vsel %vm1378_vm12, -inf, %v808_v38 }
  0xcf   :  { %v1403_v4 = vsel %vm1390_vm14, %v2007_v40, -inf }
  0xd0   :  { %1404 = vmax.xlane.f32.xlu1 %v1403_v4 }
  0xd1   :  { %v889_v43 = vpop.f32.mrf.mxu0 }
  0xd2   :  { %v890_v44 = vadd.f32 %v889_v43, %v866_v39  ;;  %v913_v48 = vpop.f32.mrf.mxu1 }
  0xd3   :  { %v959_v47 = vpop.f32.mrf.mxu3 }
  0xd4   :  { %v937_v49 = vpop.f32.mrf.mxu2  ;;  %v914_v42 = vadd.f32 %v913_v48, %v890_v44 }
  0xd6   :  { %v938_v53 = vadd.f32 %v937_v49, %v914_v42 }
  0xd8   :  { %v960_v54 = vadd.f32 %v959_v47, %v938_v53 }
  0xd9   :  { %v991_v55 = vpop.f32.mrf.mxu0 }
  0xda   :  { %v2013_v57 = vsel %vm1379_vm0, -inf, %v960_v54  ;;  %v1017_v59 = vpop.f32.mrf.mxu1 }
  0xdb   :  { %v1065_v58 = vpop.f32.mrf.mxu3  ;;  %v1406_v7 = vsel %vm1390_vm14, %v2013_v57, -inf  ;;  %v1018_v61 = vadd.f32 %v1017_v59, %v991_v55 }
  0xdc   :  { %v1041_v60 = vpop.f32.mrf.mxu2  ;;  %1407 = vmax.xlane.f32.xlu2 %v1406_v7 }
  0xdd   :  { %v1042_v50 = vadd.f32 %v1041_v60, %v1018_v61 }
  0xdf   :  { %v1066_v0 = vadd.f32 %v1065_v58, %v1042_v50 }
  0xe1   :  { %v1089_v11 = vpop.f32.mrf.mxu0 }
  0xe2   :  { %v1090_v52 = vadd.f32 %v1089_v11, %v1066_v0  ;;  %v1111_v1 = vpop.f32.mrf.mxu1 }
  0xe3   :  { %v1169_v63 = vpop.f32.mrf.mxu3 }
  0xe4   :  { %v1143_v2 = vpop.f32.mrf.mxu2  ;;  %v1112_v5 = vadd.f32 %v1111_v1, %v1090_v52 }
  0xe5   :  { %v1170_v6 = vadd.f32 %v1169_v63, %v1143_v2 }
  0xe6   :  { %v1388_v9 = vsel %vm1380_vm2, -inf, %v1112_v5 }
  0xe7   :  { %v1409_v12 = vsel %vm1390_vm14, %v1388_v9, -inf }
  0xe8   :  { %1410 = vmax.xlane.f32.xlu0 %v1409_v12 }
  0xe9   :  { %v1193_v14 = vpop.f32.mrf.mxu0 }
  0xea   :  { %v1194_v15 = vadd.f32 %v1193_v14, %v1170_v6  ;;  %v1217_v17 = vpop.f32.mrf.mxu1 }
  0xeb   :  { %v1263_v20 = vpop.f32.mrf.mxu3 }
  0xec   :  { %v1241_v18 = vpop.f32.mrf.mxu2  ;;  %v1218_v19 = vadd.f32 %v1217_v17, %v1194_v15 }
  0xee   :  { %v1242_v23 = vadd.f32 %v1241_v18, %v1218_v19 }
  0xf0   :  { %v1264_v24 = vadd.f32 %v1263_v20, %v1242_v23 }
  0xf2   :  { %v1389_v13 = vsel %vm1381_vm4, -inf, %v1264_v24 }
  0xf3   :  { %v1412_v8 = vsel %vm1390_vm14, %v1389_v13, -inf }
  0xf4   :  { %1413 = vmax.xlane.f32.xlu1 %v1412_v8 }
 0x113   :  { %v1393_v25 = vpop.xlane.xlu1 %1392 }
 0x114   :  { %v1415_v26 = vsub.f32 %v1984_v35, %v1393_v25 }
 0x116   :  { %v1423_v27 = vmul.f32 1.442695, %v1415_v26 }
 0x118   :  { %1620 = vpow2.f32 %v1423_v27 }
 0x11e   :  { %v2024_v28 = vpop.eup %1620 }
 0x11f   :  { %v1396_v29 = vpop.xlane.xlu2 %1395  ;;  %v1439_v30 = vsel %vm1390_vm14, %v2024_v28, 0.0 }
 0x120   :  { %v1416_v31 = vsub.f32 %v1989_v51, %v1396_v29  ;;  %1440 = vadd.xlane.f32.xlu2 %v1439_v30 }
 0x122   :  { %v1425_v21 = vmul.f32 1.442695, %v1416_v31 }
 0x124   :  { %1622 = vpow2.f32 %v1425_v21 }
 0x12a   :  { %v2029_v32 = vpop.eup %1622 }
 0x12b   :  { %v1399_v33 = vpop.xlane.xlu0 %1398  ;;  %v1442_v34 = vsel %vm1390_vm14, %v2029_v32, 0.0 }
 0x12c   :  { %v1417_v35 = vsub.f32 %v1995_v3, %v1399_v33  ;;  %1443 = vadd.xlane.f32.xlu0 %v1442_v34 }
 0x12e   :  { %v1427_v36 = vmul.f32 1.442695, %v1417_v35 }
 0x130   :  { %1624 = vpow2.f32 %v1427_v36 }
 0x136   :  { %v2034_v37 = vpop.eup %1624 }
 0x137   :  { %v1402_v38 = vpop.xlane.xlu2 %1401  ;;  %v1445_v51 = vsel %vm1390_vm14, %v2034_v37, 0.0 }
 0x138   :  { %v1418_v39 = vsub.f32 %v2001_v22, %v1402_v38  ;;  %1446 = vadd.xlane.f32.xlu1 %v1445_v51 }
 0x13a   :  { %v1429_v41 = vmul.f32 1.442695, %v1418_v39 }
 0x13c   :  { %1626 = vpow2.f32 %v1429_v41 }
 0x142   :  { %v2039_v4 = vpop.eup %1626 }
 0x143   :  { %v1405_v43 = vpop.xlane.xlu1 %1404  ;;  %v1448_v3 = vsel %vm1390_vm14, %v2039_v4, 0.0 }
 0x144   :  { %v1419_v44 = vsub.f32 %v2007_v40, %v1405_v43  ;;  %1449 = vadd.xlane.f32.xlu2 %v1448_v3 }
 0x146   :  { %v1431_v45 = vmul.f32 1.442695, %v1419_v44 }
 0x148   :  { %1628 = vpow2.f32 %v1431_v45 }
 0x14e   :  { %v2044_v46 = vpop.eup %1628 }
 0x14f   :  { %v1408_v47 = vpop.xlane.xlu2 %1407  ;;  %v1451_v22 = vsel %vm1390_vm14, %v2044_v46, 0.0 }
 0x150   :  { %v1420_v48 = vsub.f32 %v2013_v57, %v1408_v47  ;;  %1452 = vadd.xlane.f32.xlu0 %v1451_v22 }
 0x152   :  { %v1433_v49 = vmul.f32 1.442695, %v1420_v48 }
 0x154   :  { %1630 = vpow2.f32 %v1433_v49 }
 0x15a   :  { %v2049_v42 = vpop.eup %1630 }
 0x15b   :  { %v1411_v53 = vpop.xlane.xlu0 %1410  ;;  %v1454_v40 = vsel %vm1390_vm14, %v2049_v42, 0.0 }
 0x15c   :  { %v1421_v54 = vsub.f32 %v1388_v9, %v1411_v53  ;;  %1455 = vadd.xlane.f32.xlu1 %v1454_v40 }
 0x15e   :  { %v1435_v55 = vmul.f32 1.442695, %v1421_v54 }
 0x160   :  { %1632 = vpow2.f32 %v1435_v55 }
 0x166   :  { %v2053_v56 = vpop.eup %1632 }
 0x167   :  { %v1414_v58 = vpop.xlane.xlu1 %1413  ;;  %v1457_v59 = vsel %vm1390_vm14, %v2053_v56, 0.0 }
 0x168   :  { %v1422_v57 = vsub.f32 %v1389_v13, %v1414_v58  ;;  %1458 = vadd.xlane.f32.xlu2 %v1457_v59 }
 0x16a   :  { %v1437_v7 = vmul.f32 1.442695, %v1422_v57 }
 0x16c   :  { %1634 = vpow2.f32 %v1437_v7 }
 0x172   :  { %v2057_v60 = vpop.eup %1634 }
 0x173   :  { %v1460_v61 = vsel %vm1390_vm14, %v2057_v60, 0.0 }
 0x174   :  { %1461 = vadd.xlane.f32.xlu0 %v1460_v61 }
 0x193   :  { %v1441_v62 = vpop.xlane.xlu2 %1440 }
 0x194   :  { %1636 = vrcp.f32 %v1441_v62  ;;  %v1474_v52 = vand.u32 2147483648, %v1441_v62  ;;  %v1472_v1 = vand.u32 2147483647, %v1441_v62  ;;  %vm1468_vm10 = vweird.f32 %v1441_v62 }
 0x196   :  { %v1475_v6 = vor.u32 1.1754944e-38, %v1474_v52  ;;  %vm1473_vm6 = vcmp.eq.f32.partialorder %v1472_v1, 8.507059e+37 }
 0x19a   :  { %v1637_v50 = vpop.eup %1636 }
 0x19b   :  { %v1464_v0 = vmul.f32 %v1637_v50, %v1441_v62  ;;  %vm1469_vm9 = vweird.f32 %v1637_v50 }
 0x19c   :  { %vm1470_vm5 = vmor %vm1468_vm10, %vm1469_vm9 }
 0x19d   :  { %v1465_v11 = vsub.f32 1.0, %v1464_v0 }
 0x19f   :  { %v1466_v63 = vmul.f32 %v1637_v50, %v1465_v11  ;;  %v1444_v2 = vpop.xlane.xlu0 %1443 }
 0x1a0   :  { %1638 = vrcp.f32 %v1444_v2  ;;  %v1489_v17 = vand.u32 2147483648, %v1444_v2  ;;  %v1487_v19 = vand.u32 2147483647, %v1444_v2  ;;  %vm1483_vm8 = vweird.f32 %v1444_v2 }
 0x1a1   :  { %v1467_v5 = vadd.f32 %v1637_v50, %v1466_v63 }
 0x1a2   :  { %v1490_v24 = vor.u32 1.1754944e-38, %v1489_v17  ;;  %vm1488_vm12 = vcmp.eq.f32.partialorder %v1487_v19, 8.507059e+37 }
 0x1a3   :  { %v1471_v9 = vsel %vm1470_vm5, %v1637_v50, %v1467_v5 }
 0x1a4   :  { %v1476_v10 = vsel %vm1473_vm6, %v1475_v6, %v1471_v9 }
 0x1a5   :  { %v1477_v12 = vmul.f32 %v2024_v28, %v1476_v10 }
 0x1a6   :  { %v1639_v14 = vpop.eup %1638 }
 0x1a7   :  { %1583 = vst.msk [vmem:[#allocation7] sm:$0x1] %vm1390_vm14, %v1477_v12  ;;  %v1479_v15 = vmul.f32 %v1639_v14, %v1444_v2  ;;  %vm1484_vm7 = vweird.f32 %v1639_v14 }
 0x1a8   :  { %vm1485_vm11 = vmor %vm1483_vm8, %vm1484_vm7 }
 0x1a9   :  { %v1480_v16 = vsub.f32 1.0, %v1479_v15 }
 0x1ab   :  { %v1481_v18 = vmul.f32 %v1639_v14, %v1480_v16  ;;  %v1447_v20 = vpop.xlane.xlu1 %1446 }
 0x1ac   :  { %1640 = vrcp.f32 %v1447_v20  ;;  %v1504_v29 = vand.u32 2147483648, %v1447_v20  ;;  %v1502_v31 = vand.u32 2147483647, %v1447_v20  ;;  %vm1498_vm15 = vweird.f32 %v1447_v20 }
 0x1ad   :  { %v1482_v23 = vadd.f32 %v1639_v14, %v1481_v18 }
 0x1ae   :  { %v1505_v34 = vor.u32 1.1754944e-38, %v1504_v29  ;;  %vm1503_vm1 = vcmp.eq.f32.partialorder %v1502_v31, 8.507059e+37 }
 0x1af   :  { %v1486_v13 = vsel %vm1485_vm11, %v1639_v14, %v1482_v23 }
 0x1b0   :  { %v1491_v8 = vsel %vm1488_vm12, %v1490_v24, %v1486_v13 }
 0x1b1   :  { %v1492_v25 = vmul.f32 %v2029_v32, %v1491_v8 }
 0x1b2   :  { %v1641_v26 = vpop.eup %1640 }
 0x1b3   :  { %1584 = vst.msk [vmem:[#allocation7 + $0x1] sm:$0x1] %vm1390_vm14, %v1492_v25  ;;  %v1494_v27 = vmul.f32 %v1641_v26, %v1447_v20  ;;  %vm1499_vm13 = vweird.f32 %v1641_v26 }
 0x1b4   :  { %vm1500_vm0 = vmor %vm1498_vm15, %vm1499_vm13 }
 0x1b5   :  { %v1495_v28 = vsub.f32 1.0, %v1494_v27 }
 0x1b7   :  { %v1496_v30 = vmul.f32 %v1641_v26, %v1495_v28  ;;  %v1450_v21 = vpop.xlane.xlu2 %1449 }
 0x1b8   :  { %1642 = vrcp.f32 %v1450_v21  ;;  %v1519_v41 = vand.u32 2147483648, %v1450_v21  ;;  %v1517_v3 = vand.u32 2147483647, %v1450_v21  ;;  %vm1513_vm3 = vweird.f32 %v1450_v21 }
 0x1b9   :  { %v1497_v33 = vadd.f32 %v1641_v26, %v1496_v30 }
 0x1ba   :  { %v1520_v47 = vor.u32 1.1754944e-38, %v1519_v41  ;;  %vm1518_vm9 = vcmp.eq.f32.partialorder %v1517_v3, 8.507059e+37 }
 0x1bb   :  { %v1501_v35 = vsel %vm1500_vm0, %v1641_v26, %v1497_v33 }
 0x1bc   :  { %v1506_v36 = vsel %vm1503_vm1, %v1505_v34, %v1501_v35 }
 0x1bd   :  { %v1507_v32 = vmul.f32 %v2034_v37, %v1506_v36 }
 0x1be   :  { %v1643_v38 = vpop.eup %1642 }
 0x1bf   :  { %1585 = vst.msk [vmem:[#allocation7 + $0x2] sm:$0x1] %vm1390_vm14, %v1507_v32  ;;  %v1509_v51 = vmul.f32 %v1643_v38, %v1450_v21  ;;  %vm1514_vm2 = vweird.f32 %v1643_v38 }
 0x1c0   :  { %vm1515_vm4 = vmor %vm1513_vm3, %vm1514_vm2 }
 0x1c1   :  { %v1510_v39 = vsub.f32 1.0, %v1509_v51 }
 0x1c3   :  { %v1511_v43 = vmul.f32 %v1643_v38, %v1510_v39  ;;  %v1453_v44 = vpop.xlane.xlu0 %1452 }
 0x1c4   :  { %1644 = vrcp.f32 %v1453_v44  ;;  %v1534_v54 = vand.u32 2147483648, %v1453_v44  ;;  %v1532_v58 = vand.u32 2147483647, %v1453_v44  ;;  %vm1528_vm5 = vweird.f32 %v1453_v44 }
 0x1c5   :  { %v1512_v45 = vadd.f32 %v1643_v38, %v1511_v43 }
 0x1c6   :  { %v1535_v7 = vor.u32 1.1754944e-38, %v1534_v54  ;;  %vm1533_vm7 = vcmp.eq.f32.partialorder %v1532_v58, 8.507059e+37 }
 0x1c7   :  { %v1516_v22 = vsel %vm1515_vm4, %v1643_v38, %v1512_v45 }
 0x1c8   :  { %v1521_v48 = vsel %vm1518_vm9, %v1520_v47, %v1516_v22 }
 0x1c9   :  { %v1522_v37 = vmul.f32 %v2039_v4, %v1521_v48 }
 0x1ca   :  { %v1645_v49 = vpop.eup %1644 }
 0x1cb   :  { %1586 = vst.msk [vmem:[#allocation7 + $0x3] sm:$0x1] %vm1390_vm14, %v1522_v37  ;;  %v1524_v53 = vmul.f32 %v1645_v49, %v1453_v44  ;;  %vm1529_vm10 = vweird.f32 %v1645_v49 }
 0x1cc   :  { %vm1530_vm6 = vmor %vm1528_vm5, %vm1529_vm10 }
 0x1cd   :  { %v1525_v40 = vsub.f32 1.0, %v1524_v53 }
 0x1cf   :  { %v1526_v55 = vmul.f32 %v1645_v49, %v1525_v40  ;;  %v1456_v59 = vpop.xlane.xlu1 %1455 }
 0x1d0   :  { %1646 = vrcp.f32 %v1456_v59  ;;  %v1549_v52 = vand.u32 2147483648, %v1456_v59  ;;  %v1547_v1 = vand.u32 2147483647, %v1456_v59  ;;  %vm1543_vm11 = vweird.f32 %v1456_v59 }
 0x1d1   :  { %v1527_v57 = vadd.f32 %v1645_v49, %v1526_v55 }
 0x1d2   :  { %v1550_v6 = vor.u32 1.1754944e-38, %v1549_v52  ;;  %vm1548_vm13 = vcmp.eq.f32.partialorder %v1547_v1, 8.507059e+37 }
 0x1d3   :  { %v1531_v61 = vsel %vm1530_vm6, %v1645_v49, %v1527_v57 }
 0x1d4   :  { %v1536_v62 = vsel %vm1533_vm7, %v1535_v7, %v1531_v61 }
 0x1d5   :  { %v1537_v4 = vmul.f32 %v2044_v46, %v1536_v62 }
 0x1d6   :  { %v1647_v50 = vpop.eup %1646 }
 0x1d7   :  { %1587 = vst.msk [vmem:[#allocation7 + $0x4] sm:$0x1] %vm1390_vm14, %v1537_v4  ;;  %v1539_v0 = vmul.f32 %v1647_v50, %v1456_v59  ;;  %vm1544_vm8 = vweird.f32 %v1647_v50 }
 0x1d8   :  { %vm1545_vm12 = vmor %vm1543_vm11, %vm1544_vm8 }
 0x1d9   :  { %v1540_v11 = vsub.f32 1.0, %v1539_v0 }
 0x1db   :  { %v1541_v63 = vmul.f32 %v1647_v50, %v1540_v11  ;;  %v1459_v2 = vpop.xlane.xlu2 %1458 }
 0x1dc   :  { %1648 = vrcp.f32 %v1459_v2  ;;  %v1564_v16 = vand.u32 2147483648, %v1459_v2  ;;  %v1562_v18 = vand.u32 2147483647, %v1459_v2  ;;  %vm1558_vm0 = vweird.f32 %v1459_v2 }
 0x1dd   :  { %v1542_v5 = vadd.f32 %v1647_v50, %v1541_v63 }
 0x1de   :  { %v1565_v23 = vor.u32 1.1754944e-38, %v1564_v16  ;;  %vm1563_vm2 = vcmp.eq.f32.partialorder %v1562_v18, 8.507059e+37 }
 0x1df   :  { %v1546_v9 = vsel %vm1545_vm12, %v1647_v50, %v1542_v5 }
 0x1e0   :  { %v1551_v10 = vsel %vm1548_vm13, %v1550_v6, %v1546_v9 }
 0x1e1   :  { %v1552_v46 = vmul.f32 %v2049_v42, %v1551_v10 }
 0x1e2   :  { %v1649_v12 = vpop.eup %1648 }
 0x1e3   :  { %1588 = vst.msk [vmem:[#allocation7 + $0x5] sm:$0x1] %vm1390_vm14, %v1552_v46  ;;  %v1554_v14 = vmul.f32 %v1649_v12, %v1459_v2  ;;  %vm1559_vm15 = vweird.f32 %v1649_v12 }
 0x1e4   :  { %vm1560_vm1 = vmor %vm1558_vm0, %vm1559_vm15 }
 0x1e5   :  { %v1555_v15 = vsub.f32 1.0, %v1554_v14 }
 0x1e7   :  { %v1556_v17 = vmul.f32 %v1649_v12, %v1555_v15  ;;  %v1462_v19 = vpop.xlane.xlu0 %1461 }
 0x1e8   :  { %1650 = vrcp.f32 %v1462_v19  ;;  %v1579_v27 = vand.u32 2147483648, %v1462_v19  ;;  %v1577_v29 = vand.u32 2147483647, %v1462_v19  ;;  %vm1573_vm4 = vweird.f32 %v1462_v19 }
 0x1e9   :  { %v1557_v20 = vadd.f32 %v1649_v12, %v1556_v17 }
 0x1ea   :  { %v1580_v31 = vor.u32 1.1754944e-38, %v1579_v27  ;;  %vm1578_vm10 = vcmp.eq.f32.partialorder %v1577_v29, 8.507059e+37 }
 0x1eb   :  { %v1561_v24 = vsel %vm1560_vm1, %v1649_v12, %v1557_v20 }
 0x1ec   :  { %v1566_v13 = vsel %vm1563_vm2, %v1565_v23, %v1561_v24 }
 0x1ed   :  { %v1567_v42 = vmul.f32 %v2053_v56, %v1566_v13 }
 0x1ee   :  { %v1651_v8 = vpop.eup %1650 }
 0x1ef   :  { %1589 = vst.msk [vmem:[#allocation7 + $0x6] sm:$0x1] %vm1390_vm14, %v1567_v42  ;;  %v1569_v25 = vmul.f32 %v1651_v8, %v1462_v19  ;;  %vm1574_vm3 = vweird.f32 %v1651_v8 }
 0x1f0   :  { %vm1575_vm9 = vmor %vm1573_vm4, %vm1574_vm3 }
 0x1f1   :  { %v1570_v26 = vsub.f32 1.0, %v1569_v25 }
 0x1f3   :  { %v1571_v28 = vmul.f32 %v1651_v8, %v1570_v26 }
 0x1f5   :  { %v1572_v30 = vadd.f32 %v1651_v8, %v1571_v28 }
 0x1f7   :  { %v1576_v56 = vsel %vm1575_vm9, %v1651_v8, %v1572_v30 }
 0x1f8   :  { %v1581_v21 = vsel %vm1578_vm10, %v1580_v31, %v1576_v56 }
 0x1f9   :  { %v1582_v33 = vmul.f32 %v2057_v60, %v1581_v21 }
 0x1fb   :  { %1590 = vst.msk [vmem:[#allocation7 + $0x7] sm:$0x1] %vm1390_vm14, %v1582_v33 }
 0x1fc   :  { %1603 = dma.vmem_to_hbm [thread:$0]  %s1596_s26, 128, %s1598_s29, [#allocation6], %s1709_s30, %s1709_s30, %s1710_s5  }
 0x1fd   :  { %1702 = dma.done.wait [#allocation6], 128  }
 0x1fe   :  { %1703 = vsyncadd [#allocation6], 4294967168 }
 0x1ff   :  { %1608 = vsyncpa [#allocation5], 1 }
 0x200   :  { %1609 = vsyncpa [#allocation6], 1 }

</bundles_post_ra>
